<compile_context>
chip_gen: v6e
topology: v6e:2x2x1
jax: 0.10.0
libtpu: 0.0.40
codegen_flags: <defaults>
</compile_context>

<pallas_src>
import jax
import jax.numpy as jnp
import numpy as np
from jax.experimental import pallas as pl
from jax.experimental.pallas import tpu as pltpu  # noqa: F401  (TPU backend assumed)


# ---------------------------- Pallas kernels ----------------------------

def _to_gray_kernel(x_ref, o_ref):
    # x_ref: (C, B, H*W) channel-leading layout -> o_ref: (B, H*W)
    # torch.mean(x, dim=1, keepdim=True) with f32 accumulation, pure VPU adds.
    C = x_ref.shape[0]
    acc = x_ref[0].astype(jnp.float32)
    for c in range(1, C):
        acc = acc + x_ref[c].astype(jnp.float32)
    o_ref[...] = (acc * (1.0 / C)).astype(o_ref.dtype)


def _scale2_kernel(x_ref, uh_ref, uwt_ref, o_ref):
    # Nearest-neighbour x2 upsample via two *batched* 0/1 duplication matmuls.
    # x_ref: (P*H, W)  (P = N*C planes, rows folded into M)
    # uwt  : (W, 2W)   column (lane) duplication
    # uh   : (2*P*H, P*H)  row (sublane) duplication
    # o_ref: (2*P*H, 2W)
    y = jnp.dot(x_ref[...].astype(jnp.float32), uwt_ref[...],
                preferred_element_type=jnp.float32)            # (P*H, 2W)
    z = jnp.dot(uh_ref[...], y,
                preferred_element_type=jnp.float32)            # (2*P*H, 2W)
    o_ref[...] = z.astype(o_ref.dtype)


def _classify_kernel(x_ref, w_ref, b_ref, logits_ref, probs_ref, ent_ref):
    # Fused: nn.Linear(256,3) + Softmax(dim=1) + Entropy().
    z = jnp.dot(x_ref[...].astype(jnp.float32), w_ref[...],
                preferred_element_type=jnp.float32) + b_ref[...]
    logits_ref[...] = z.astype(logits_ref.dtype)
    zs = z - jnp.max(z, axis=1, keepdims=True)
    ez = jnp.exp(zs)
    p = ez / jnp.sum(ez, axis=1, keepdims=True)
    probs_ref[...] = p.astype(probs_ref.dtype)
    ent_ref[...] = jnp.sum(-p * jnp.log(p + 1e-07), axis=1, keepdims=True)


# ---------------------------- wrapper -----------------------------------

class DGNetppTrainerPallas:
    """Pallas implementation of the computable pieces of DGNetpp_Trainer."""

    def __init__(self, seed: int = 0):
        # classifier(): nn.Linear(256, 3), kaiming_uniform_ weight, zero bias.
        key = jax.random.PRNGKey(seed)
        bound = float(np.sqrt(6.0 / 256.0))        # gain*sqrt(3/fan_in), fan_in=256
        w = jax.random.uniform(key, (3, 256), jnp.float32, -bound, bound)
        self.fc_w = jnp.transpose(w)               # (256, 3)
        self.fc_b = jnp.zeros((1, 3), jnp.float32)
        self._dup_cache = {}                       # (P*H, W) -> (uh, uwt)

    # ---- cached 0/1 duplication matrices for nearest-neighbour x2 upsample ----
    def _dup_matrices(self, ph: int, w: int):
        key = (ph, w)
        if key not in self._dup_cache:
            uh = (np.arange(2 * ph)[:, None] // 2
                  == np.arange(ph)[None, :]).astype(np.float32)      # (2PH, PH)
            uwt = (np.arange(w)[:, None]
                   == np.arange(2 * w)[None, :] // 2).astype(np.float32)  # (W, 2W)
            self._dup_cache[key] = (jnp.asarray(uh), jnp.asarray(uwt))
        return self._dup_cache[key]

    # ---- self.single = to_gray(False) : channel mean, whole batch in one step ----
    def single(self, x):
        N, C, H, W = x.shape
        # channel-leading layout so the kernel reduces with plain leading-dim adds
        xf = jnp.transpose(x, (1, 0, 2, 3)).reshape(C, N, H * W)
        out = pl.pallas_call(
            _to_gray_kernel,
            out_shape=jax.ShapeDtypeStruct((N, H * W), x.dtype),
            grid=(1,),
            in_specs=[pl.BlockSpec((C, N, H * W), lambda i: (0, 0, 0))],
            out_specs=pl.BlockSpec((N, H * W), lambda i: (0, 0)),
        )(xf)
        return out.reshape(N, 1, H, W)

    # ---- scale2(x): nearest upsample x2 unless H > 128, whole batch in one step ----
    def scale2(self, x):
        N, C, H, W = x.shape
        if H > 128:
            return x
        ph = N * C * H
        uh, uwt = self._dup_matrices(ph, W)
        x2d = x.reshape(ph, W)                     # free reshape (contiguous)
        out = pl.pallas_call(
            _scale2_kernel,
            out_shape=jax.ShapeDtypeStruct((2 * ph, 2 * W), x.dtype),
            grid=(1,),
            in_specs=[pl.BlockSpec((ph, W), lambda i: (0, 0)),
                      pl.BlockSpec((2 * ph, ph), lambda i: (0, 0)),
                      pl.BlockSpec((W, 2 * W), lambda i: (0, 0))],
            out_specs=pl.BlockSpec((2 * ph, 2 * W), lambda i: (0, 0)),
        )(x2d, uh, uwt)
        return out.reshape(N, C, 2 * H, 2 * W)     # free reshape back to NCHW

    # ---- fc + Softmax(dim=1) + Entropy(), fully fused (image_classification path) ----
    def classify(self, feat):
        B, D = feat.shape
        logits, probs, ent = pl.pallas_call(
            _classify_kernel,
            out_shape=(jax.ShapeDtypeStruct((B, 3), jnp.float32),
                       jax.ShapeDtypeStruct((B, 3), jnp.float32),
                       jax.ShapeDtypeStruct((B, 1), jnp.float32)),
            grid=(1,),
            in_specs=[pl.BlockSpec((B, D), lambda i: (0, 0)),
                      pl.BlockSpec((D, 3), lambda i: (0, 0)),
                      pl.BlockSpec((1, 3), lambda i: (0, 0))],
            out_specs=(pl.BlockSpec((B, 3), lambda i: (0, 0)),
                       pl.BlockSpec((B, 3), lambda i: (0, 0)),
                       pl.BlockSpec((B, 1), lambda i: (0, 0))),
        )(feat, self.fc_w, self.fc_b)
        return logits, probs, ent[:, 0]

    # ---- self.fc = classifier() ----
    def fc(self, feat):
        return self.classify(feat)[0]

    # ---- forward(x_a, x_b) ----
    def forward(self, x_a, x_b):
        # self.eval() / self.train() are training-mode toggles -> no-ops here.
        N = x_a.shape[0]
        xs = jnp.concatenate([x_a, x_b], axis=0)   # stack a/b -> one launch each
        gray = self.single(xs)                     # inputs to gen_a/b_encode
        up = self.scale2(xs)                       # inputs to id_a / id_b
        s_a_in, s_b_in = gray[:N], gray[N:]
        f_a_in, f_b_in = up[:N], up[N:]
        # TODO(synk): gen_a/b_encode, id_a/id_b and gen_a/b_decode are not defined
        # in the provided source, so x_ab / x_ba cannot be produced; we return the
        # Pallas-computed inputs to those (undefined) sub-networks.
        return (s_a_in, s_b_in, f_a_in, f_b_in)


# ---------------------------- demo / check ------------------------------

if __name__ == "__main__":
    key = jax.random.PRNGKey(0)
    ka, kb, kf = jax.random.split(key, 3)
    x_a = jax.random.normal(ka, (2, 3, 16, 16), jnp.float32)
    x_b = jax.random.normal(kb, (2, 3, 16, 16), jnp.float32)
    feats = jax.random.normal(kf, (2, 256), jnp.float32)  # flattened encoder feature

    trainer = DGNetppTrainerPallas()

    s_a, s_b, f_a, f_b = trainer.forward(x_a, x_b)
    logits, probs, ent = trainer.classify(feats)
    jax.block_until_ready((s_a, s_b, f_a, f_b, logits, probs, ent))

    # ---- reference checks (plain JAX) ----
    ref_gray_a = jnp.mean(x_a, axis=1, keepdims=True)
    ref_gray_b = jnp.mean(x_b, axis=1, keepdims=True)
    ref_up_a = jnp.repeat(jnp.repeat(x_a, 2, axis=2), 2, axis=3)
    ref_up_b = jnp.repeat(jnp.repeat(x_b, 2, axis=2), 2, axis=3)
    ref_logits = feats @ trainer.fc_w + trainer.fc_b
    ref_probs = jax.nn.softmax(ref_logits, axis=1)
    ref_ent = jnp.sum(-ref_probs * jnp.log(ref_probs + 1e-07), axis=1)

    assert np.allclose(np.asarray(s_a), np.asarray(ref_gray_a), atol=1e-5)
    assert np.allclose(np.asarray(s_b), np.asarray(ref_gray_b), atol=1e-5)
    assert np.allclose(np.asarray(f_a), np.asarray(ref_up_a), atol=1e-5)
    assert np.allclose(np.asarray(f_b), np.asarray(ref_up_b), atol=1e-5)
    assert np.allclose(np.asarray(logits), np.asarray(ref_logits), atol=1e-4)
    assert np.allclose(np.asarray(probs), np.asarray(ref_probs), atol=1e-5)
    assert np.allclose(np.asarray(ent), np.asarray(ref_ent), atol=1e-5)

    print("KERNEL_OK")
</pallas_src>

<mosaic_0001>
module attributes {stable_mosaic.version = 11 : i64} {
  func.func @_to_gray_kernel(%arg0: i32, %arg1: memref<3x4x256xf32, #tpu.memory_space<vmem>>, %arg2: memref<4x256xf32, #tpu.memory_space<vmem>>) attributes {dimension_semantics = [#tpu.dimension_semantics<arbitrary>], iteration_bounds = array<i64: 1>, scalar_prefetch = 0 : i64, scratch_operands = 0 : i64, tpu.core_type = #tpu.core_type<tc>, window_params = [{pipeline_mode = #tpu.pipeline_mode<synchronous>, transform_indices = @transform_0, window_bounds = array<i64: 3, 4, 256>}, {pipeline_mode = #tpu.pipeline_mode<synchronous>, transform_indices = @transform_1, window_bounds = array<i64: 4, 256>}]} {
    %c0 = arith.constant 0 : index
    %c0_0 = arith.constant 0 : index
    %c0_1 = arith.constant 0 : index
    %0 = vector.load %arg1[%c0, %c0_0, %c0_1] : memref<3x4x256xf32, #tpu.memory_space<vmem>>, vector<1x4x256xf32>
    %1 = vector.shape_cast %0 : vector<1x4x256xf32> to vector<4x256xf32>
    %c1 = arith.constant 1 : index
    %c0_2 = arith.constant 0 : index
    %c0_3 = arith.constant 0 : index
    %2 = vector.load %arg1[%c1, %c0_2, %c0_3] : memref<3x4x256xf32, #tpu.memory_space<vmem>>, vector<1x4x256xf32>
    %3 = vector.shape_cast %2 : vector<1x4x256xf32> to vector<4x256xf32>
    %4 = arith.addf %1, %3 : vector<4x256xf32>
    %c2 = arith.constant 2 : index
    %c0_4 = arith.constant 0 : index
    %c0_5 = arith.constant 0 : index
    %5 = vector.load %arg1[%c2, %c0_4, %c0_5] : memref<3x4x256xf32, #tpu.memory_space<vmem>>, vector<1x4x256xf32>
    %6 = vector.shape_cast %5 : vector<1x4x256xf32> to vector<4x256xf32>
    %7 = arith.addf %4, %6 : vector<4x256xf32>
    %cst = arith.constant 0.333333343 : f32
    %8 = vector.broadcast %cst : f32 to vector<4x256xf32>
    %9 = arith.mulf %7, %8 : vector<4x256xf32>
    %c0_6 = arith.constant 0 : index
    %c0_7 = arith.constant 0 : index
    %10 = vector.load %arg2[%c0_6, %c0_7] : memref<4x256xf32, #tpu.memory_space<vmem>>, vector<4x256xf32>
    tpu.vector_store %arg2[%c0_6, %c0_7], %9 {strides = array<i32>} : memref<4x256xf32, #tpu.memory_space<vmem>>, vector<4x256xf32>,
    return
  }
  func.func @transform_0(%arg0: i32) -> (i32, i32, i32) {
    %c0_i32 = arith.constant 0 : i32
    %c0_i32_0 = arith.constant 0 : i32
    %c0_i32_1 = arith.constant 0 : i32
    %c0_i32_2 = arith.constant 0 : i32
    return %c0_i32, %c0_i32_0, %c0_i32_1 : i32, i32, i32
  }
  func.func @transform_1(%arg0: i32) -> (i32, i32) {
    %c0_i32 = arith.constant 0 : i32
    %c0_i32_0 = arith.constant 0 : i32
    %c0_i32_1 = arith.constant 0 : i32
    return %c0_i32, %c0_i32_0 : i32, i32
  }
}

</mosaic_0001>

<bundles_post_ra>
// kernel: tpu_custom_call.1
= control target key start
LH: loop header
LB: loop body
LE: loop exit
PB: predicated region body
PF: predicated region fallthrough
CT: control target
= control target key end

     0   :  { %6 = vsyncpa [#allocation3], 0  ;;  %s115_s0 = inlined_call_operand.hbm [shape: f32[3,4,256], index: 0, kind: input, shape index: {}]   ;;  %s116_s1 = inlined_call_operand.hbm [shape: f32[4,256], index: 1, kind: output, shape index: {}]  }
   0x1   :  { %7 = vsyncpa [#allocation4], 0  ;;  %s95_s6 = smov [#allocation2]  }
   0x2   :  { %s13_s7 = sshll.u32 %s95_s6, 4  ;;  %s14_s7 = int_to_ptr.vmem [resolvable:$true] %s13_s7 }
   0x3   :  { %s59_s8 = scalar_lea.vmem %s14_s7, 384  ;;  %p64_p1 = scmp.lt.s32.totalorder %s14_s7, %s14_s7 }
   0x4   :  { %p60_p0 = scmp.ne.s32.totalorder %s14_s7, %s59_s8  ;;  %p65_p2 = scmp.lt.s32.totalorder %s59_s8, %s59_s8 }
   0x6   :  { %p66_p3 = por %p65_p2, %p64_p1 }
   0x8   :  { %p67_p4 = pnand %p66_p3, %p60_p0 }
   0xa   :  { %70 = shalt.err (!%p67_p4)
}
   0xb   :  { %s96_s9 = smov 128   ;;  %s97_s10 = smov 8  }
   0xc   :  { %19 = dma.hbm_to_vmem [thread:$0]  %s115_s0, 384, %s14_s7, [#allocation3], %s96_s9, %s96_s9, %s97_s10  }
   0xd   :  { %91 = dma.done.wait [#allocation3], 384  }
   0xe   :  { %92 = vsyncadd [#allocation3], 4294966912  ;;  %v23_v0 = vld [vmem:[#allocation2] sm:$0xff]  ;;  %v25_v1 = vld [vmem:[#allocation2 + $0x8] sm:$0xff]  ;;  %s98_s13 = smov [#allocation5]  }
   0xf   :  { %v28_v2 = vld [vmem:[#allocation2 + $0x10] sm:$0xff]  ;;  %v26_v3 = vadd.f32 %v25_v1, %v23_v0  ;;  %s38_s14 = sshll.u32 %s98_s13, 4  ;;  %s39_s14 = int_to_ptr.vmem [resolvable:$true] %s38_s14 }
  0x10   :  { %s71_s15 = scalar_lea.vmem %s39_s14, 128  ;;  %p76_p6 = scmp.lt.s32.totalorder %s39_s14, %s39_s14 }
  0x11   :  { %v29_v4 = vadd.f32 %v28_v2, %v26_v3  ;;  %p72_p5 = scmp.ne.s32.totalorder %s39_s14, %s71_s15  ;;  %p77_p7 = scmp.lt.s32.totalorder %s71_s15, %s71_s15 }
  0x13   :  { %v30_v5 = vmul.f32 0.33333334, %v29_v4  ;;  %p78_p8 = por %p77_p7, %p76_p6 }
  0x15   :  { %31 = vst [vmem:[#allocation5] sm:$0xff] %v30_v5  ;;  %p79_p9 = pnand %p78_p8, %p72_p5 }
  0x17   :  { %82 = shalt.err (!%p79_p9)
}
  0x18   :  { %41 = dma.vmem_to_hbm [thread:$0]  %s39_s14, 128, %s116_s1, [#allocation4]  }
  0x19   :  { %93 = dma.done.wait [#allocation4], 128  }
  0x1a   :  { %94 = vsyncadd [#allocation4], 4294967168 }
  0x1b   :  { %45 = vsyncpa [#allocation3], 1 }
  0x1c   :  { %46 = vsyncpa [#allocation4], 1 }

</bundles_post_ra>
